<compile_context>
chip_gen: v7x
topology: tpu7x:2x2x1
jax: 0.10.0
libtpu: 0.0.40
codegen_flags: <defaults>
</compile_context>

<pallas_src>
import functools

import jax
import jax.numpy as jnp
from jax.experimental import pallas as pl
from jax.experimental.pallas import tpu as pltpu


def _seq_tile(s, cap=512):
    """Largest divisor of s that is <= cap and (a multiple of 8 or == s)."""
    t = min(s, cap)
    while t > 0:
        if s % t == 0 and (t % 8 == 0 or t == s):
            return t
        t -= 1
    return s


# --------------------------------------------------------------------------------------
# Kernel 1: fused QKV projection (all heads at once) with folded LoRA+bias(+scale)
# effective weights held resident in VMEM.   grid = (B, S_tiles), all parallel.
# --------------------------------------------------------------------------------------
def _qkv_kernel(hs_ref, w_ref, b_ref, q_ref, k_ref, v_ref, *, num_heads, head_dim):
    x = hs_ref[0]                                                     # (ts, E)    bf16
    y = (jnp.dot(x, w_ref[...], preferred_element_type=jnp.float32)
         + b_ref[...]).astype(q_ref.dtype)                            # (ts, 3*Dt) bf16
    dt = num_heads * head_dim
    for h in range(num_heads):                                        # static lane slices
        o = h * head_dim
        q_ref[0, h] = y[:, o:o + head_dim]
        k_ref[0, h] = y[:, dt + o:dt + o + head_dim]
        v_ref[0, h] = y[:, 2 * dt + o:2 * dt + o + head_dim]


# --------------------------------------------------------------------------------------
# Kernel 2: flash-style causal attention (all heads per step) + fused output projection.
#   grid = (B, Q_tiles, KV_tiles); (B, Q_tiles) parallel, KV_tiles "arbitrary".
#   Output block (1, tq, E) is resident across the KV axis; written once at the end.
# --------------------------------------------------------------------------------------
def _attn_kernel(q_ref, k_ref, v_ref, mask_ref, w_out_ref, b_out_ref, out_ref,
                 m_sc, l_sc, acc_sc, *, num_heads, head_dim):
    qi = pl.program_id(1)
    ki = pl.program_id(2)
    nk = pl.num_programs(2)

    @pl.when(ki == 0)
    def _():
        m_sc[...] = jnp.full(m_sc.shape, -jnp.inf, jnp.float32)
        l_sc[...] = jnp.zeros(l_sc.shape, jnp.float32)
        acc_sc[...] = jnp.zeros(acc_sc.shape, jnp.float32)

    def step(apply_mask):
        q = q_ref[0]                                                  # (H, tq, hd) bf16
        k = k_ref[0]                                                  # (H, tk, hd) bf16
        v = v_ref[0]                                                  # (H, tk, hd) bf16
        s = jnp.einsum("hqd,hkd->hqk", q, k,
                       preferred_element_type=jnp.float32)            # (H, tq, tk) f32
        if apply_mask:                                                # diagonal tile only
            s = s + mask_ref[...]
        m_new = jnp.maximum(m_sc[...], s.max(axis=-1, keepdims=True))
        alpha = jnp.exp(m_sc[...] - m_new)
        p = jnp.exp(s - m_new)
        l_sc[...] = alpha * l_sc[...] + p.sum(axis=-1, keepdims=True)
        acc_sc[...] = alpha * acc_sc[...] + jnp.einsum(
            "hqk,hkd->hqd", p.astype(v.dtype), v,
            preferred_element_type=jnp.float32)
        m_sc[...] = m_new

    # Interior (fully visible) tiles: no mask work in the steady state.
    @pl.when(ki < qi)
    def _():
        step(apply_mask=False)

    # Diagonal-straddling tile: apply the resident additive causal mask.
    @pl.when(ki == qi)
    def _():
        step(apply_mask=True)

    # ki > qi: fully masked -> compute skipped; its K/V DMA is elided by the clamped
    # index_map (block index repeats, so no re-fetch).

    @pl.when(ki == nk - 1)
    def _():
        # Finalize all heads and fold them into ONE full-depth output projection.
        o = acc_sc[...] * pl.reciprocal(l_sc[...], approx=True)       # (H, tq, hd) f32
        merged = jnp.concatenate([o[h] for h in range(num_heads)],
                                 axis=-1).astype(w_out_ref.dtype)     # (tq, Dt) bf16
        out = jnp.dot(merged, w_out_ref[...],
                      preferred_element_type=jnp.float32) + b_out_ref[...]
        out_ref[0] = out.astype(out_ref.dtype)


# --------------------------------------------------------------------------------------
# Wrapper: fold weights (LoRA, c_proj, softmax scale), launch the two pallas_calls.
# --------------------------------------------------------------------------------------
def gpt2_attention_forward(hidden_states, params, *, num_heads, head_dim):
    B, S, E = hidden_states.shape
    H, hd = num_heads, head_dim
    Dt = H * hd
    f32, bf16 = jnp.float32, jnp.bfloat16

    # ---- fold LoRA adapters, output projection and softmax scale (exact at inference) --
    Wq = params["c_attn_w"][:, 0 * E:1 * E]
    Wk = params["c_attn_w"][:, 1 * E:2 * E]
    Wv = params["c_attn_w"][:, 2 * E:3 * E]
    bq = params["c_attn_b"][:, 0 * E:1 * E]
    bk = params["c_attn_b"][:, 1 * E:2 * E]
    bv = params["c_attn_b"][:, 2 * E:3 * E]

    scale = 1.0 / (float(hd) ** 0.5)
    Wq_eff = (Wq @ params["Q_C"] + params["Q_A"] @ params["Q_B"]) * scale   # (E, Dt)
    Wk_eff = Wk @ params["K_C"] + params["K_A"] @ params["K_B"]
    Wv_eff = Wv @ params["V_C"] + params["V_A"] @ params["V_B"]
    bq_eff = (bq @ params["Q_C"]) * scale                                   # (1, Dt)
    bk_eff = bk @ params["K_C"]
    bv_eff = bv @ params["V_C"]

    w_qkv = jnp.concatenate([Wq_eff, Wk_eff, Wv_eff], axis=-1).astype(bf16)  # (E, 3*Dt)
    b_qkv = jnp.concatenate([bq_eff, bk_eff, bv_eff], axis=-1).astype(f32)   # (1, 3*Dt)
    w_out = (params["W_C"] @ params["c_proj_w"]
             + params["W_A"] @ params["W_B"]).astype(bf16)                   # (Dt, E)
    b_out = params["c_proj_b"].astype(f32)                                   # (1, E)

    hs_bf16 = hidden_states.astype(bf16)

    # ---- call 1: fused QKV projection, resident weights ----
    ts = _seq_tile(S)
    qkv_shape = jax.ShapeDtypeStruct((B, H, S, hd), bf16)
    q, k, v = pl.pallas_call(
        functools.partial(_qkv_kernel, num_heads=H, head_dim=hd),
        out_shape=(qkv_shape, qkv_shape, qkv_shape),
        grid_spec=pltpu.PrefetchScalarGridSpec(
            num_scalar_prefetch=0,
            grid=(B, S // ts),
            in_specs=[
                pl.BlockSpec((1, ts, E), lambda b, si: (b, si, 0)),
                pl.BlockSpec((E, 3 * Dt), lambda b, si: (0, 0)),      # resident weight
                pl.BlockSpec((1, 3 * Dt), lambda b, si: (0, 0)),      # resident bias
            ],
            out_specs=[
                pl.BlockSpec((1, H, ts, hd), lambda b, si: (b, 0, si, 0)),
                pl.BlockSpec((1, H, ts, hd), lambda b, si: (b, 0, si, 0)),
                pl.BlockSpec((1, H, ts, hd), lambda b, si: (b, 0, si, 0)),
            ],
        ),
        compiler_params=pltpu.CompilerParams(
            dimension_semantics=("parallel", "parallel"),
            vmem_limit_bytes=64 * 1024 * 1024),
    )(hs_bf16, w_qkv, b_qkv)

    # ---- call 2: flash attention + fused output projection ----
    tq = tk = ts
    assert tq == tk, "causal tile skip / DMA clamp assume tq == tk"
    row = jax.lax.broadcasted_iota(jnp.int32, (tq, tk), 0)
    col = jax.lax.broadcasted_iota(jnp.int32, (tq, tk), 1)
    diag_mask = jnp.where(col <= row, 0.0, jnp.finfo(f32).min).astype(f32)  # additive

    out = pl.pallas_call(
        functools.partial(_attn_kernel, num_heads=H, head_dim=hd),
        out_shape=jax.ShapeDtypeStruct((B, S, E), f32),
        grid_spec=pltpu.PrefetchScalarGridSpec(
            num_scalar_prefetch=0,
            grid=(B, S // tq, S // tk),
            in_specs=[
                pl.BlockSpec((1, H, tq, hd), lambda b, qi, ki: (b, 0, qi, 0)),
                # Clamp kv block index to the causal limit: dead tiles repeat the
                # previous block index so their HBM fetch is elided.
                pl.BlockSpec((1, H, tk, hd),
                             lambda b, qi, ki: (b, 0, jnp.minimum(ki, qi), 0)),
                pl.BlockSpec((1, H, tk, hd),
                             lambda b, qi, ki: (b, 0, jnp.minimum(ki, qi), 0)),
                pl.BlockSpec((tq, tk), lambda b, qi, ki: (0, 0)),     # resident mask
                pl.BlockSpec((Dt, E), lambda b, qi, ki: (0, 0)),      # resident W_out
                pl.BlockSpec((1, E), lambda b, qi, ki: (0, 0)),       # resident b_out
            ],
            out_specs=pl.BlockSpec((1, tq, E), lambda b, qi, ki: (b, qi, 0)),
            scratch_shapes=[
                pltpu.VMEM((H, tq, 1), f32),     # running max
                pltpu.VMEM((H, tq, 1), f32),     # running denom
                pltpu.VMEM((H, tq, hd), f32),    # per-head attention accumulator
            ],
        ),
        compiler_params=pltpu.CompilerParams(
            dimension_semantics=("parallel", "parallel", "arbitrary"),
            vmem_limit_bytes=64 * 1024 * 1024),
    )(q, k, v, diag_mask, w_out, b_out)
    return out


# --------------------------------------------------------------------------------------
# Pure-JAX reference mirroring the PyTorch forward (inference, unfolded, f32).
# --------------------------------------------------------------------------------------
def ref_forward(hs, p, *, num_heads, head_dim):
    B, S, E = hs.shape
    qkv = hs @ p["c_attn_w"] + p["c_attn_b"]
    q, k, v = jnp.split(qkv, 3, axis=-1)
    q = q @ p["Q_C"] + (hs @ p["Q_A"]) @ p["Q_B"]
    k = k @ p["K_C"] + (hs @ p["K_A"]) @ p["K_B"]
    v = v @ p["V_C"] + (hs @ p["V_A"]) @ p["V_B"]

    def split_heads(x):
        return x.reshape(B, S, num_heads, head_dim).transpose(0, 2, 1, 3)

    q, k, v = split_heads(q), split_heads(k), split_heads(v)
    s = jnp.einsum("bhqd,bhkd->bhqk", q, k) / (float(head_dim) ** 0.5)
    causal = jnp.tril(jnp.ones((S, S), dtype=bool))[None, None]
    s = jnp.where(causal, s, jnp.finfo(jnp.float32).min)
    pw = jax.nn.softmax(s, axis=-1)
    o = jnp.einsum("bhqk,bhkd->bhqd", pw, v)
    merged = o.transpose(0, 2, 1, 3).reshape(B, S, num_heads * head_dim)
    lora = (merged @ p["W_A"]) @ p["W_B"]
    out = (merged @ p["W_C"]) @ p["c_proj_w"] + p["c_proj_b"]
    return out + lora


if __name__ == "__main__":
    # Small GPT2-ish config: hidden=32, heads=4, head_dim=8, hidden_size_scale=2.0
    # -> d_tilde = 64, effective head_dim = 16, LoRA rank r = 4, seq=8, batch=2.
    B, S, E = 2, 8, 32
    NUM_HEADS = 4
    HIDDEN_SIZE_SCALE = 2.0
    DT = int(E * HIDDEN_SIZE_SCALE)                        # d_tilde_model = 64
    HEAD_DIM = int((E // NUM_HEADS) * HIDDEN_SIZE_SCALE)   # 16
    R = 4

    key = jax.random.PRNGKey(0)
    keys = jax.random.split(key, 20)
    std = 0.02
    # NOTE: the torch module inits *_B params to zeros; small random values here so the
    # LoRA branches are exercised numerically (leading size-1 LoRA dims squeezed).
    params = {
        "c_attn_w": jax.random.normal(keys[0], (E, 3 * E), jnp.float32) * std,
        "c_attn_b": jax.random.normal(keys[1], (1, 3 * E), jnp.float32) * std,
        "c_proj_w": jax.random.normal(keys[2], (E, E), jnp.float32) * std,
        "c_proj_b": jax.random.normal(keys[3], (1, E), jnp.float32) * std,
        "Q_A": jax.random.normal(keys[4], (E, R), jnp.float32) * std,
        "Q_B": jax.random.normal(keys[5], (R, DT), jnp.float32) * std,
        "Q_C": jax.random.normal(keys[6], (E, DT), jnp.float32) * std,
        "K_A": jax.random.normal(keys[7], (E, R), jnp.float32) * std,
        "K_B": jax.random.normal(keys[8], (R, DT), jnp.float32) * std,
        "K_C": jax.random.normal(keys[9], (E, DT), jnp.float32) * std,
        "V_A": jax.random.normal(keys[10], (E, R), jnp.float32) * std,
        "V_B": jax.random.normal(keys[11], (R, DT), jnp.float32) * std,
        "V_C": jax.random.normal(keys[12], (E, DT), jnp.float32) * std,
        "W_A": jax.random.normal(keys[13], (DT, R), jnp.float32) * std,
        "W_B": jax.random.normal(keys[14], (R, E), jnp.float32) * std,
        "W_C": jax.random.normal(keys[15], (DT, E), jnp.float32) * std,
    }
    hidden_states = jax.random.normal(keys[16], (B, S, E), jnp.float32)

    out = gpt2_attention_forward(hidden_states, params,
                                 num_heads=NUM_HEADS, head_dim=HEAD_DIM)
    out = jax.block_until_ready(out)

    ref = ref_forward(hidden_states, params, num_heads=NUM_HEADS, head_dim=HEAD_DIM)
    assert out.shape == (B, S, E)
    assert jnp.allclose(out, ref, rtol=1e-2, atol=1e-2), "Pallas output mismatch vs reference"

    print("KERNEL_OK")
</pallas_src>

<mosaic_0001>
module attributes {stable_mosaic.version = 11 : i64} {
  func.func @_qkv_kernel(%arg0: i32, %arg1: i32, %arg2: memref<1x8x32xbf16, #tpu.memory_space<vmem>>, %arg3: memref<32x192xbf16, #tpu.memory_space<vmem>>, %arg4: memref<1x192xf32, #tpu.memory_space<vmem>>, %arg5: memref<1x4x8x16xbf16, #tpu.memory_space<vmem>>, %arg6: memref<1x4x8x16xbf16, #tpu.memory_space<vmem>>, %arg7: memref<1x4x8x16xbf16, #tpu.memory_space<vmem>>) attributes {dimension_semantics = [#tpu.dimension_semantics<parallel>, #tpu.dimension_semantics<parallel>], iteration_bounds = array<i64: 2, 1>, scalar_prefetch = 0 : i64, scratch_operands = 0 : i64, tpu.core_type = #tpu.core_type<tc>, window_params = [{transform_indices = @transform_0, window_bounds = array<i64: 1, 8, 32>}, {pipeline_mode = #tpu.pipeline_mode<synchronous>, transform_indices = @transform_1, window_bounds = array<i64: 32, 192>}, {pipeline_mode = #tpu.pipeline_mode<synchronous>, transform_indices = @transform_2, window_bounds = array<i64: 1, 192>}, {transform_indices = @transform_3, window_bounds = array<i64: 1, 4, 8, 16>}, {transform_indices = @transform_4, window_bounds = array<i64: 1, 4, 8, 16>}, {transform_indices = @transform_5, window_bounds = array<i64: 1, 4, 8, 16>}]} {
    %c0 = arith.constant 0 : index
    %c0_0 = arith.constant 0 : index
    %c0_1 = arith.constant 0 : index
    %0 = vector.load %arg2[%c0, %c0_0, %c0_1] : memref<1x8x32xbf16, #tpu.memory_space<vmem>>, vector<1x8x32xbf16>
    %1 = vector.shape_cast %0 : vector<1x8x32xbf16> to vector<8x32xbf16>
    %c0_2 = arith.constant 0 : index
    %c0_3 = arith.constant 0 : index
    %2 = vector.load %arg3[%c0_2, %c0_3] : memref<32x192xbf16, #tpu.memory_space<vmem>>, vector<32x192xbf16>
    %cst = arith.constant dense<0.000000e+00> : vector<8x192xf32>
    %3 = tpu.matmul %1, %2, %cst {dimension_numbers = #tpu.dot_dimension_numbers<[1], [0], [0], [1], [0, 0, 1, 1], [], []>} : vector<8x32xbf16>, vector<32x192xbf16>, vector<8x192xf32> -> vector<8x192xf32>
    %c0_4 = arith.constant 0 : index
    %c0_5 = arith.constant 0 : index
    %4 = vector.load %arg4[%c0_4, %c0_5] : memref<1x192xf32, #tpu.memory_space<vmem>>, vector<1x192xf32>
    %5 = vector.broadcast %4 : vector<1x192xf32> to vector<8x192xf32>
    %6 = arith.addf %3, %5 : vector<8x192xf32>
    %7 = arith.truncf %6 : vector<8x192xf32> to vector<8x192xbf16>
    %8 = vector.extract_strided_slice %7 {offsets = [0, 0], sizes = [8, 16], strides = [1, 1]} : vector<8x192xbf16> to vector<8x16xbf16>
    %c0_6 = arith.constant 0 : index
    %c0_7 = arith.constant 0 : index
    %c0_8 = arith.constant 0 : index
    %c0_9 = arith.constant 0 : index
    %9 = vector.load %arg5[%c0_6, %c0_7, %c0_8, %c0_9] : memref<1x4x8x16xbf16, #tpu.memory_space<vmem>>, vector<1x1x8x16xbf16>
    %10 = vector.shape_cast %9 : vector<1x1x8x16xbf16> to vector<8x16xbf16>
    %11 = vector.shape_cast %8 : vector<8x16xbf16> to vector<1x1x8x16xbf16>
    tpu.vector_store %arg5[%c0_6, %c0_7, %c0_8, %c0_9], %11 {strides = array<i32>} : memref<1x4x8x16xbf16, #tpu.memory_space<vmem>>, vector<1x1x8x16xbf16>,
    %12 = vector.extract_strided_slice %7 {offsets = [0, 64], sizes = [8, 16], strides = [1, 1]} : vector<8x192xbf16> to vector<8x16xbf16>
    %c0_10 = arith.constant 0 : index
    %c0_11 = arith.constant 0 : index
    %c0_12 = arith.constant 0 : index
    %c0_13 = arith.constant 0 : index
    %13 = vector.load %arg6[%c0_10, %c0_11, %c0_12, %c0_13] : memref<1x4x8x16xbf16, #tpu.memory_space<vmem>>, vector<1x1x8x16xbf16>
    %14 = vector.shape_cast %13 : vector<1x1x8x16xbf16> to vector<8x16xbf16>
    %15 = vector.shape_cast %12 : vector<8x16xbf16> to vector<1x1x8x16xbf16>
    tpu.vector_store %arg6[%c0_10, %c0_11, %c0_12, %c0_13], %15 {strides = array<i32>} : memref<1x4x8x16xbf16, #tpu.memory_space<vmem>>, vector<1x1x8x16xbf16>,
    %16 = vector.extract_strided_slice %7 {offsets = [0, 128], sizes = [8, 16], strides = [1, 1]} : vector<8x192xbf16> to vector<8x16xbf16>
    %c0_14 = arith.constant 0 : index
    %c0_15 = arith.constant 0 : index
    %c0_16 = arith.constant 0 : index
    %c0_17 = arith.constant 0 : index
    %17 = vector.load %arg7[%c0_14, %c0_15, %c0_16, %c0_17] : memref<1x4x8x16xbf16, #tpu.memory_space<vmem>>, vector<1x1x8x16xbf16>
    %18 = vector.shape_cast %17 : vector<1x1x8x16xbf16> to vector<8x16xbf16>
    %19 = vector.shape_cast %16 : vector<8x16xbf16> to vector<1x1x8x16xbf16>
    tpu.vector_store %arg7[%c0_14, %c0_15, %c0_16, %c0_17], %19 {strides = array<i32>} : memref<1x4x8x16xbf16, #tpu.memory_space<vmem>>, vector<1x1x8x16xbf16>,
    %20 = vector.extract_strided_slice %7 {offsets = [0, 16], sizes = [8, 16], strides = [1, 1]} : vector<8x192xbf16> to vector<8x16xbf16>
    %c0_18 = arith.constant 0 : index
    %c1 = arith.constant 1 : index
    %c0_19 = arith.constant 0 : index
    %c0_20 = arith.constant 0 : index
    %21 = vector.load %arg5[%c0_18, %c1, %c0_19, %c0_20] : memref<1x4x8x16xbf16, #tpu.memory_space<vmem>>, vector<1x1x8x16xbf16>
    %22 = vector.shape_cast %21 : vector<1x1x8x16xbf16> to vector<8x16xbf16>
    %23 = vector.shape_cast %20 : vector<8x16xbf16> to vector<1x1x8x16xbf16>
    tpu.vector_store %arg5[%c0_18, %c1, %c0_19, %c0_20], %23 {strides = array<i32>} : memref<1x4x8x16xbf16, #tpu.memory_space<vmem>>, vector<1x1x8x16xbf16>,
    %24 = vector.extract_strided_slice %7 {offsets = [0, 80], sizes = [8, 16], strides = [1, 1]} : vector<8x192xbf16> to vector<8x16xbf16>
    %c0_21 = arith.constant 0 : index
    %c1_22 = arith.constant 1 : index
    %c0_23 = arith.constant 0 : index
    %c0_24 = arith.constant 0 : index
    %25 = vector.load %arg6[%c0_21, %c1_22, %c0_23, %c0_24] : memref<1x4x8x16xbf16, #tpu.memory_space<vmem>>, vector<1x1x8x16xbf16>
    %26 = vector.shape_cast %25 : vector<1x1x8x16xbf16> to vector<8x16xbf16>
    %27 = vector.shape_cast %24 : vector<8x16xbf16> to vector<1x1x8x16xbf16>
    tpu.vector_store %arg6[%c0_21, %c1_22, %c0_23, %c0_24], %27 {strides = array<i32>} : memref<1x4x8x16xbf16, #tpu.memory_space<vmem>>, vector<1x1x8x16xbf16>,
    %28 = vector.extract_strided_slice %7 {offsets = [0, 144], sizes = [8, 16], strides = [1, 1]} : vector<8x192xbf16> to vector<8x16xbf16>
    %c0_25 = arith.constant 0 : index
    %c1_26 = arith.constant 1 : index
    %c0_27 = arith.constant 0 : index
    %c0_28 = arith.constant 0 : index
    %29 = vector.load %arg7[%c0_25, %c1_26, %c0_27, %c0_28] : memref<1x4x8x16xbf16, #tpu.memory_space<vmem>>, vector<1x1x8x16xbf16>
    %30 = vector.shape_cast %29 : vector<1x1x8x16xbf16> to vector<8x16xbf16>
    %31 = vector.shape_cast %28 : vector<8x16xbf16> to vector<1x1x8x16xbf16>
    tpu.vector_store %arg7[%c0_25, %c1_26, %c0_27, %c0_28], %31 {strides = array<i32>} : memref<1x4x8x16xbf16, #tpu.memory_space<vmem>>, vector<1x1x8x16xbf16>,
    %32 = vector.extract_strided_slice %7 {offsets = [0, 32], sizes = [8, 16], strides = [1, 1]} : vector<8x192xbf16> to vector<8x16xbf16>
    %c0_29 = arith.constant 0 : index
    %c2 = arith.constant 2 : index
    %c0_30 = arith.constant 0 : index
    %c0_31 = arith.constant 0 : index
    %33 = vector.load %arg5[%c0_29, %c2, %c0_30, %c0_31] : memref<1x4x8x16xbf16, #tpu.memory_space<vmem>>, vector<1x1x8x16xbf16>
    %34 = vector.shape_cast %33 : vector<1x1x8x16xbf16> to vector<8x16xbf16>
    %35 = vector.shape_cast %32 : vector<8x16xbf16> to vector<1x1x8x16xbf16>
    tpu.vector_store %arg5[%c0_29, %c2, %c0_30, %c0_31], %35 {strides = array<i32>} : memref<1x4x8x16xbf16, #tpu.memory_space<vmem>>, vector<1x1x8x16xbf16>,
    %36 = vector.extract_strided_slice %7 {offsets = [0, 96], sizes = [8, 16], strides = [1, 1]} : vector<8x192xbf16> to vector<8x16xbf16>
    %c0_32 = arith.constant 0 : index
    %c2_33 = arith.constant 2 : index
    %c0_34 = arith.constant 0 : index
    %c0_35 = arith.constant 0 : index
    %37 = vector.load %arg6[%c0_32, %c2_33, %c0_34, %c0_35] : memref<1x4x8x16xbf16, #tpu.memory_space<vmem>>, vector<1x1x8x16xbf16>
    %38 = vector.shape_cast %37 : vector<1x1x8x16xbf16> to vector<8x16xbf16>
    %39 = vector.shape_cast %36 : vector<8x16xbf16> to vector<1x1x8x16xbf16>
    tpu.vector_store %arg6[%c0_32, %c2_33, %c0_34, %c0_35], %39 {strides = array<i32>} : memref<1x4x8x16xbf16, #tpu.memory_space<vmem>>, vector<1x1x8x16xbf16>,
    %40 = vector.extract_strided_slice %7 {offsets = [0, 160], sizes = [8, 16], strides = [1, 1]} : vector<8x192xbf16> to vector<8x16xbf16>
    %c0_36 = arith.constant 0 : index
    %c2_37 = arith.constant 2 : index
    %c0_38 = arith.constant 0 : index
    %c0_39 = arith.constant 0 : index
    %41 = vector.load %arg7[%c0_36, %c2_37, %c0_38, %c0_39] : memref<1x4x8x16xbf16, #tpu.memory_space<vmem>>, vector<1x1x8x16xbf16>
    %42 = vector.shape_cast %41 : vector<1x1x8x16xbf16> to vector<8x16xbf16>
    %43 = vector.shape_cast %40 : vector<8x16xbf16> to vector<1x1x8x16xbf16>
    tpu.vector_store %arg7[%c0_36, %c2_37, %c0_38, %c0_39], %43 {strides = array<i32>} : memref<1x4x8x16xbf16, #tpu.memory_space<vmem>>, vector<1x1x8x16xbf16>,
    %44 = vector.extract_strided_slice %7 {offsets = [0, 48], sizes = [8, 16], strides = [1, 1]} : vector<8x192xbf16> to vector<8x16xbf16>
    %c0_40 = arith.constant 0 : index
    %c3 = arith.constant 3 : index
    %c0_41 = arith.constant 0 : index
    %c0_42 = arith.constant 0 : index
    %45 = vector.load %arg5[%c0_40, %c3, %c0_41, %c0_42] : memref<1x4x8x16xbf16, #tpu.memory_space<vmem>>, vector<1x1x8x16xbf16>
    %46 = vector.shape_cast %45 : vector<1x1x8x16xbf16> to vector<8x16xbf16>
    %47 = vector.shape_cast %44 : vector<8x16xbf16> to vector<1x1x8x16xbf16>
    tpu.vector_store %arg5[%c0_40, %c3, %c0_41, %c0_42], %47 {strides = array<i32>} : memref<1x4x8x16xbf16, #tpu.memory_space<vmem>>, vector<1x1x8x16xbf16>,
    %48 = vector.extract_strided_slice %7 {offsets = [0, 112], sizes = [8, 16], strides = [1, 1]} : vector<8x192xbf16> to vector<8x16xbf16>
    %c0_43 = arith.constant 0 : index
    %c3_44 = arith.constant 3 : index
    %c0_45 = arith.constant 0 : index
    %c0_46 = arith.constant 0 : index
    %49 = vector.load %arg6[%c0_43, %c3_44, %c0_45, %c0_46] : memref<1x4x8x16xbf16, #tpu.memory_space<vmem>>, vector<1x1x8x16xbf16>
    %50 = vector.shape_cast %49 : vector<1x1x8x16xbf16> to vector<8x16xbf16>
    %51 = vector.shape_cast %48 : vector<8x16xbf16> to vector<1x1x8x16xbf16>
    tpu.vector_store %arg6[%c0_43, %c3_44, %c0_45, %c0_46], %51 {strides = array<i32>} : memref<1x4x8x16xbf16, #tpu.memory_space<vmem>>, vector<1x1x8x16xbf16>,
    %52 = vector.extract_strided_slice %7 {offsets = [0, 176], sizes = [8, 16], strides = [1, 1]} : vector<8x192xbf16> to vector<8x16xbf16>
    %c0_47 = arith.constant 0 : index
    %c3_48 = arith.constant 3 : index
    %c0_49 = arith.constant 0 : index
    %c0_50 = arith.constant 0 : index
    %53 = vector.load %arg7[%c0_47, %c3_48, %c0_49, %c0_50] : memref<1x4x8x16xbf16, #tpu.memory_space<vmem>>, vector<1x1x8x16xbf16>
    %54 = vector.shape_cast %53 : vector<1x1x8x16xbf16> to vector<8x16xbf16>
    %55 = vector.shape_cast %52 : vector<8x16xbf16> to vector<1x1x8x16xbf16>
    tpu.vector_store %arg7[%c0_47, %c3_48, %c0_49, %c0_50], %55 {strides = array<i32>} : memref<1x4x8x16xbf16, #tpu.memory_space<vmem>>, vector<1x1x8x16xbf16>,
    return
  }
  func.func @transform_0(%arg0: i32, %arg1: i32) -> (i32, i32, i32) {
    %c0_i32 = arith.constant 0 : i32
    %c0_i32_0 = arith.constant 0 : i32
    return %arg0, %arg1, %c0_i32 : i32, i32, i32
  }
  func.func @transform_1(%arg0: i32, %arg1: i32) -> (i32, i32) {
    %c0_i32 = arith.constant 0 : i32
    %c0_i32_0 = arith.constant 0 : i32
    %c0_i32_1 = arith.constant 0 : i32
    return %c0_i32, %c0_i32_0 : i32, i32
  }
  func.func @transform_2(%arg0: i32, %arg1: i32) -> (i32, i32) {
    %c0_i32 = arith.constant 0 : i32
    %c0_i32_0 = arith.constant 0 : i32
    %c0_i32_1 = arith.constant 0 : i32
    return %c0_i32, %c0_i32_0 : i32, i32
  }
  func.func @transform_3(%arg0: i32, %arg1: i32) -> (i32, i32, i32, i32) {
    %c0_i32 = arith.constant 0 : i32
    %c0_i32_0 = arith.constant 0 : i32
    %c0_i32_1 = arith.constant 0 : i32
    return %arg0, %c0_i32, %arg1, %c0_i32_0 : i32, i32, i32, i32
  }
  func.func @transform_4(%arg0: i32, %arg1: i32) -> (i32, i32, i32, i32) {
    %c0_i32 = arith.constant 0 : i32
    %c0_i32_0 = arith.constant 0 : i32
    %c0_i32_1 = arith.constant 0 : i32
    return %arg0, %c0_i32, %arg1, %c0_i32_0 : i32, i32, i32, i32
  }
  func.func @transform_5(%arg0: i32, %arg1: i32) -> (i32, i32, i32, i32) {
    %c0_i32 = arith.constant 0 : i32
    %c0_i32_0 = arith.constant 0 : i32
    %c0_i32_1 = arith.constant 0 : i32
    return %arg0, %c0_i32, %arg1, %c0_i32_0 : i32, i32, i32, i32
  }
}

</mosaic_0001>

<bundles_post_ra>
// kernel: tpu_custom_call.1
= control target key start
LH: loop header
LB: loop body
LE: loop exit
PB: predicated region body
PF: predicated region fallthrough
CT: control target
= control target key end

     0   :  { %11 = vsyncpa [#allocation3], 0  ;;  %s1474_s0 = inlined_call_operand.hbm [shape: bf16[2,8,32], index: 0, kind: input, shape index: {}]   ;;  %s1475_s1 = inlined_call_operand.hbm [shape: bf16[32,192], index: 1, kind: input, shape index: {}]   ;;  %s1476_s2 = inlined_call_operand.hbm [shape: f32[1,192], index: 2, kind: input, shape index: {}]   ;;  %s1477_s3 = inlined_call_operand.hbm [shape: bf16[2,4,8,16], index: 3, kind: output, shape index: {0}]   ;;  %s1478_s4 = inlined_call_operand.hbm [shape: bf16[2,4,8,16], index: 4, kind: output, shape index: {1}]   ;;  %s1479_s5 = inlined_call_operand.hbm [shape: bf16[2,4,8,16], index: 5, kind: output, shape index: {2}]  }
   0x1   :  { %13 = vsyncpa [#allocation3 + $0x1], 0 }
   0x2   :  { %14 = vsyncpa [#allocation6], 0 }
   0x3   :  { %15 = vsyncpa [#allocation4], 0 }
   0x4   :  { %17 = vsyncpa [#allocation4 + $0x1], 0 }
   0x5   :  { %18 = vsyncpa [#allocation10], 0 }
   0x6   :  { %20 = vsyncpa [#allocation10 + $0x1], 0  ;;  %s1114_s18 = smov 0   ;;  %s1116_s19 = smov 0  }
   0x7   :  { %s1118_s20 = smov 0   ;;  %s1120_s21 = smov 0  }
   0x8   :  { %s1122_s22 = smov 0   ;;  %s1124_s23 = smov 0  }
   0x9 LB: > { %s1145_s24 = sadd.s32 4294967295, %s1065_s23   ;;  %s1483_s25 = sadd.s32 4294967294, %s1065_s23   ;;  %s1065_s23 = sphi %s1124_s23, %s26_s23   ;;  %s1061_s22 = sphi %s1122_s22, %s1508_s22   ;;  %s1057_s21 = sphi %s1120_s21, %s1507_s21   ;;  %s1053_s20 = sphi %s1118_s20, %s1506_s20   ;;  %s1049_s19 = sphi %s1116_s19, %s1505_s19   ;;  %s1045_s18 = sphi %s1114_s18, %s1504_s18  }
   0xa   : > { %p60_p0 = scmp.ne.s32.totalorder %s1049_s19, %s1045_s18  ;;  %p1480_p1 = scmp.eq.s32.totalorder %s1145_s24, 0 }
   0xb   : > { %p134_p3 = scmp.eq.s32.totalorder %s1483_s25, 1  ;;  %p678_p5 = scmp.ge.s32.totalorder %s1065_s23, 1 }
   0xc   : > { %p1156_p4 = por %p1480_p1, %p60_p0  ;;  %p197_p7 = scmp.lt.s32.totalorder %s1065_s23, 3 }
   0xd   : > { %p1161_p6 = por %p134_p3, %p60_p0  ;;  %s1067_s29 = smov [#allocation5]  }
   0xe   : > { %s1488_s26 = scalar_select %p1156_p4, 1, 0 }
   0xf   : > { %s1489_s27 = scalar_select %p1161_p6, 1, 0 }
  0x10   : > { %p1166_p8 = pnand %p678_p5, %p197_p7  ;;  %s209_s30 = sshll.u32 %s1067_s29, 4  ;;  %s1170_s30 = int_to_ptr.vmem [resolvable:$true] %s209_s30 }
  0x11   : > { %s1068_s7 = smov [#allocation7]   ;;  %s833_s11 = scalar_lea.hbm %s1475_s1, 512 }
  0x12   : > { %p739_p9 = pneg %p1166_p8  ;;  %s223_s8 = sshll.u32 %s1068_s7, 4  ;;  %s1181_s8 = int_to_ptr.vmem [resolvable:$true] %s223_s8 }
  0x13   : > { %p834_p12 = scmp.ne.s32.totalorder %s1475_s1, %s833_s11  ;;  %p840_p5 = scmp.lt.u32.totalorder %s833_s11, %s1475_s1 }
  0x14   : > { %p1177_p11 = pnand %p739_p9, %p1480_p1 }
  0x16   : > { %p835_p13 = pneg %p1177_p11 }
  0x18   : > { %p836_p0 = pnand %p835_p13, %p834_p12 }
  0x1a   : > { %p837_p3 = pneg %p836_p0 }
  0x1c   : > { %p842_p7 = pnand %p840_p5, %p837_p3 }
  0x1e   : > { %845 = shalt.err (!%p842_p7)
}
  0x1f   : > { %s846_s16 = scalar_lea.vmem %s1170_s30, 512  ;;  %p854_p2 = scmp.lt.s32.totalorder %s1170_s30, %s1170_s30 }
  0x20   : > { %p847_p9 = scmp.ne.s32.totalorder %s1170_s30, %s846_s16  ;;  %p855_p12 = scmp.lt.s32.totalorder %s846_s16, %s846_s16 }
  0x22   : > { %p849_p10 = pnand %p847_p9, %p835_p13  ;;  %p856_p0 = por %p855_p12, %p854_p2 }
  0x24   : > { %p850_p1 = pneg %p849_p10 }
  0x26   : > { %p857_p6 = pnand %p856_p0, %p850_p1 }
  0x28   : > { %860 = shalt.err (!%p857_p6)
}
  0x29   : > { %s1069_s17 = smov 128   ;;  %s1070_s29 = smov 8  }
  0x2a   : > { %742 = dma.hbm_to_vmem [thread:$0]  (!%p1177_p11), %s1475_s1, 512, %s1170_s30, [#allocation6], %s1069_s17, %s1069_s17, %s1070_s29  }
  0x2b   : > { %s861_s12 = scalar_lea.hbm %s1476_s2, 32 }
  0x2c   : > { %p862_p2 = scmp.ne.s32.totalorder %s1476_s2, %s861_s12  ;;  %p868_p10 = scmp.lt.u32.totalorder %s861_s12, %s1476_s2 }
  0x2e   : > { %p864_p1 = pnand %p862_p2, %p835_p13 }
  0x30   : > { %p865_p6 = pneg %p864_p1 }
  0x32   : > { %p870_p3 = pnand %p868_p10, %p865_p6 }
  0x34   : > { %873 = shalt.err (!%p870_p3)
}
  0x35   : > { %s874_s30 = scalar_lea.vmem %s1181_s8, 32  ;;  %p882_p12 = scmp.lt.s32.totalorder %s1181_s8, %s1181_s8 }
  0x36   : > { %p875_p5 = scmp.ne.s32.totalorder %s1181_s8, %s874_s30  ;;  %p883_p0 = scmp.lt.s32.totalorder %s874_s30, %s874_s30 }
  0x38   : > { %p877_p7 = pnand %p875_p5, %p835_p13  ;;  %p884_p2 = por %p883_p0, %p882_p12 }
  0x3a   : > { %p878_p9 = pneg %p877_p7 }
  0x3c   : > { %p885_p1 = pnand %p884_p2, %p878_p9 }
  0x3e   : > { %888 = shalt.err (!%p885_p1)
}
  0x3f   : > { %745 = dma.hbm_to_vmem [thread:$0]  (!%p1177_p11), %s1476_s2, 32, %s1181_s8, [#allocation6]  }
  0x40   : > { %s38_s7 = sadd.s32 1, %s1061_s22  ;;  %s47_s9 = sadd.s32 1, %s1053_s20 }
  0x41   : > { %p40_p13 = scmp.ge.s32.totalorder %s38_s7, 2  ;;  %p54_p6 = scmp.ne.s32.totalorder %s1053_s20, %s1049_s19 }
  0x42   : > { %p55_p10 = scmp.eq.s32.totalorder %s1065_s23, 0  ;;  %p762_p3 = scmp.lt.s32.totalorder %s1065_s23, 2 }
  0x43   : > { %s1510_s7 = smov (%p40_p13, %s38_s7), 0  ;;  %p1492_p7 = scmp.eq.s32.totalorder %s1145_s24, 1 }
  0x44   : > { %p56_p5 = por %p55_p10, %p54_p6  ;;  %s42_s10 = ssub.s32 %s1061_s22, %s1510_s7 }
  0x45   : > { %p1245_p9 = por %p1492_p7, %p54_p6  ;;  %s234_s11 = sand.u32 1, %s1053_s20  }
  0x46   : > { %p45_p12 = scmp.eq.s32.totalorder %s42_s10, 0  ;;  %s682_s8 = sshll.u32 %s234_s11, 2 }
  0x47   : > { %s1493_s6 = scalar_select %p1245_p9, 1, 0 }
  0x48   : > { %s683_s12 = sshll.u32 %s1061_s22, 6  ;;  %s238_s30 = scalar_lea.vmem [#allocation2], %s682_s8 }
  0x49   : > { %s1254_s13 = scalar_select %p45_p12, %s1053_s20, %s47_s9  }
  0x4a   : > { %s1259_s16 = scalar_lea.hbm %s1474_s0, %s683_s12  ;;  %s246_s17 = sshll.u32 %s238_s30, 4  ;;  %s1267_s17 = int_to_ptr.vmem [resolvable:$true] %s246_s17 }
  0x4b   : > { %p1263_p11 = pnand %p762_p3, %p56_p5  ;;  %s235_s9 = scalar_lea.sflag [#allocation3], %s234_s11 }
  0x4c   : > { %s889_s10 = scalar_lea.hbm %s1259_s16, 64  ;;  %s894_s14 = scalar_lea.hbm %s1474_s0, 128 }
  0x4d   : > { %p890_p0 = scmp.ne.s32.totalorder %s1259_s16, %s889_s10  ;;  %p891_p2 = pneg %p1263_p11 }
  0x4e   : > { %p895_p6 = scmp.lt.u32.totalorder %s1259_s16, %s1474_s0  ;;  %p896_p10 = scmp.lt.u32.totalorder %s894_s14, %s889_s10 }
  0x4f   : > { %p892_p1 = pnand %p891_p2, %p890_p0  ;;  %p898_p5 = scmp.lt.u32.totalorder %s889_s10, %s1259_s16 }
  0x50   : > { %p897_p3 = por %p896_p10, %p895_p6 }
  0x51   : > { %p893_p13 = pneg %p892_p1 }
  0x52   : > { %p899_p7 = por %p898_p5, %p897_p3 }
  0x54   : > { %p900_p12 = pnand %p899_p7, %p893_p13 }
  0x56   : > { %903 = shalt.err (!%p900_p12)
}
  0x57   : > { %s904_s11 = scalar_lea.vmem %s1267_s17, 64  ;;  %s1071_s8 = smov [#allocation2]  }
  0x58   : > { %p905_p0 = scmp.ne.s32.totalorder %s1267_s17, %s904_s11  ;;  %s909_s12 = sshll.u32 %s1071_s8, 4  ;;  %s910_s12 = int_to_ptr.vmem [resolvable:$false] %s909_s12 }
  0x59   : > { %s911_s15 = scalar_lea.vmem %s910_s12, 128  ;;  %p912_p4 = scmp.lt.s32.totalorder %s1267_s17, %s910_s12 }
  0x5a   : > { %p907_p1 = pnand %p905_p0, %p891_p2  ;;  %p913_p6 = scmp.lt.s32.totalorder %s911_s15, %s904_s11 }
  0x5c   : > { %p908_p9 = pneg %p907_p1  ;;  %p914_p10 = por %p913_p6, %p912_p4 }
  0x5e   : > { %p915_p3 = pnand %p914_p10, %p908_p9 }
  0x60   : > { %918 = shalt.err (!%p915_p3)
}
  0x61   : > { %749 = dma.hbm_to_vmem [thread:$0]  (!%p1263_p11), %s1259_s16, 64, %s1267_s17, %s235_s9  }
  0x62   : > { %255 = sbr.rel (%p1166_p8) target bundleno = 515 (0x203), region = 32  ;;  %s1297_s10 = sand.u32 (!%p1166_p8), 1, %s1049_s19  }
  0x63   : > { %s685_s14 = sshll.u32 (!%p1166_p8), %s1297_s10, 2  ;;  %s258_s30 = scalar_lea.sflag (!%p1166_p8), [#allocation3], %s1297_s10 }
  0x64   : > { %s261_s11 = scalar_lea.vmem (!%p1166_p8), [#allocation2], %s685_s14  ;;  %p1495_p4 = scmp.ne.s32.totalorder (!%p1166_p8), %s1488_s26, 0 }
  0x69   : > { %1028 = dma.done.wait (%p1495_p4), %s258_s30, 64  }
  0x6a   : > { %1030 = vsyncadd (%p1495_p4), %s258_s30, 4294967232  ;;  %p1496_p9 = scmp.eq.s32.totalorder %s1145_s24, 0 }
  0x6c   : > { %1032 = dma.done.wait (%p1496_p9), [#allocation6], 544   ;;  %p1497_p11 = pmov %p1496_p9 }
  0x6d   : > { %v1072_v0 = vmov 0   ;;  %v827_v1 = vld [vmem:[#allocation5 + $0x4] ss:$8 sps:$4 sm:$0xff]   ;;  %v829_v2 = vld [vmem:[#allocation5] ss:$8 sps:$4 sm:$0xff]   ;;  %vm344_vm0 = vcmask 261120   ;;  %v314_v6 = vlaneseq }
  0x6e   : > { %1034 = vsyncadd (%p1497_p11), [#allocation6], 4294966752  ;;  %380 = vmatprep.mubr.bf16.mxu0 %v1072_v0  ;;  %348 = vmatprep.subr.bf16.mxu0 %v827_v1  ;;  %v830_v3 = vld [vmem:[#allocation5 + $0x14] ss:$8 sps:$4 sm:$0xff]   ;;  %v832_v4 = vld [vmem:[#allocation5 + $0x10] ss:$8 sps:$4 sm:$0xff]  }
  0x6f   : > { %349 = vmatpush1.bf16.msra.mxu0 %v829_v2  ;;  %v307_v5 = vld [vmem:[%s261_s11] sm:$0xf]  ;;  %v315_v7 = vshrl.u32 %v314_v6, 7  ;;  %v312_v9 = vld [vmem:[#allocation7] sm:$0x3]  ;;  %s1310_s26 = sshll.u32 %s1297_s10, 4 }
  0x70   : > { %350 = vmatprep.subr.bf16.mxu0 %v830_v3  ;;  %vm391_vm1 = vcmask 125952   ;;  %s1073_s28 = smov 32   ;;  %s1484_s16 = smov 64  }
  0x71   : > { %v316_v8 = vsub.s32 0, %v315_v7  ;;  %v320_v10 = vsub.s32 1, %v315_v7  ;;  %s1314_s17 = scalar_lea.vmem [#allocation8], %s1310_s26  ;;  %s1319_s29 = scalar_lea.vmem [#allocation11], %s1310_s26 }
  0x72   : > { %s1075_s9 = smov 16   ;;  %s1076_s8 = smov 48  }
  0x73   : > { %351 = vmatpush1.bf16.msra.mxu0 %v832_v4  ;;  %v317_v11 = vrot.slane %v312_v9, %v316_v8  ;;  %v321_v12 = vrot.slane %v312_v9, %v320_v10  ;;  %s1077_s12 = smov 112   ;;  %s1078_s15 = smov 96  }
  0x74   : > { %s1079_s14 = smov 80   ;;  %s298_s30 = scalar_lea.vmem [#allocation9], %s1310_s26 }
  0x75   : > { %s491_s11 = sshll.u32 %s298_s30, 4  ;;  %s1326_s25 = sshll.u32 %s1057_s21, 8  ;;  %s1330_s11 = int_to_ptr.vmem [resolvable:$true] %s491_s11 }
  0x76   : > { %695 = vmatmul.mubr.msk.bf16.vlgmr.msra.gmra.mrb[0].mxu0 %vm344_vm0, %v307_v5  ;;  %s1336_s26 = scalar_lea.hbm %s1478_s4, %s1326_s25  ;;  %p1498_p2 = scmp.ne.s32.totalorder %s1493_s6, 0 }
 0x149   : > { %v382_v13 = vpop.f32.mrb[0].mxu0 }
 0x14a   : > { %v383_v14 = vadd.f32 %v382_v13, %v317_v11  ;;  %v384_v15 = vpop.f32.mrb[1].mxu0 }
 0x14b   : > { %v385_v16 = vadd.f32 %v384_v15, %v321_v12  ;;  %v386_v17 = vpop.f32.mrb[2].mxu0 }
 0x14c   : > { %v389_v18 = vpack.c.bf16 %v383_v14, %v383_v14  ;;  %v387_v19 = vpop.f32.mrb[3].mxu0 }
 0x14d   : > { %v390_v20 = vpack.c.bf16 %v385_v16, %v385_v16 }
 0x14e   : > { %424 = vrot.lane.b32.xlu1 %v389_v18, %s1073_s28  ;;  %396 = vrot.lane.b32.xlu0 %v389_v18, %s1484_s16  ;;  %392 = vst.msk [vmem:[%s1314_s17] sm:$0xf] %vm391_vm1, %v389_v18  ;;  %s454_s28 = sand.u32 1, %s1145_s24   ;;  %s919_s24 = scalar_lea.vmem %s1330_s11, 256 }
 0x14f   : > { %400 = vst.msk [vmem:[%s1319_s29] sm:$0xf] %vm391_vm1, %v390_v20  ;;  %s1340_s21 = scalar_lea.sflag [#allocation10], %s454_s28  ;;  %p920_p8 = scmp.ne.s32.totalorder %s1330_s11, %s919_s24 }
 0x151   : > { %p921_p13 = pnand %p920_p8, %p1498_p2 }
 0x152   : > { %439 = vrot.lane.b32.xlu1 %v389_v18, %s1075_s9  ;;  %406 = vrot.lane.b32.xlu0 %v389_v18, %s1076_s8 }
 0x153   : > { %p922_p5 = pneg %p921_p13 }
 0x156   : > { %414 = vrot.lane.b32.xlu1 %v390_v20, %s1077_s12  ;;  %401 = vrot.lane.b32.xlu0 %v389_v18, %s1077_s12  ;;  %s1080_s12 = smov [#allocation9]  }
 0x15a   : > { %429 = vrot.lane.b32.xlu1 %v390_v20, %s1078_s15  ;;  %419 = vrot.lane.b32.xlu0 %v389_v18, %s1078_s15  ;;  %s923_s15 = sshll.u32 %s1080_s12, 4  ;;  %s924_s15 = int_to_ptr.vmem [resolvable:$false] %s923_s15 }
 0x15b   : > { %p926_p7 = scmp.lt.s32.totalorder %s1330_s11, %s924_s15 }
 0x15e   : > { %444 = vrot.lane.b32.xlu1 %v390_v20, %s1079_s14  ;;  %434 = vrot.lane.b32.xlu0 %v389_v18, %s1079_s14  ;;  %s925_s14 = scalar_lea.vmem %s924_s15, 512 }
 0x15f   : > { %p927_p12 = scmp.lt.s32.totalorder %s925_s14, %s919_s24 }
 0x161   : > { %p928_p0 = por %p927_p12, %p926_p7 }
 0x163   : > { %p929_p1 = pnand %p928_p0, %p922_p5 }
 0x1c0   : > { %v425_v21 = vpop.permute.xlu1 %424  ;;  %v397_v22 = vpop.permute.xlu0 %396 }
 0x1c1   : > { %702 = vst.msk [vmem:[%s298_s30 + $0x8] sm:$0xf] %vm391_vm1, %v425_v21  ;;  %399 = vst.msk [vmem:[%s298_s30] sm:$0xf] %vm391_vm1, %v397_v22 }
 0x1c4   : > { %v440_v23 = vpop.permute.xlu1 %439  ;;  %v407_v24 = vpop.permute.xlu0 %406 }
 0x1c5   : > { %705 = vst.msk [vmem:[%s298_s30 + $0xc] sm:$0xf] %vm391_vm1, %v440_v23  ;;  %698 = vst.msk [vmem:[%s298_s30 + $0x4] sm:$0xf] %vm391_vm1, %v407_v24 }
 0x1c6   : > { %932 = shalt.err (!%p929_p1)
}
 0x1c7   : > { %s933_s30 = scalar_lea.hbm %s1336_s26, 256  ;;  %s937_s8 = scalar_lea.hbm %s1478_s4, 512 }
 0x1c8   : > { %p934_p6 = scmp.ne.s32.totalorder %s1336_s26, %s933_s30  ;;  %p938_p4 = scmp.lt.u32.totalorder %s1336_s26, %s1478_s4 }
 0x1c9   : > { %p939_p9 = scmp.lt.u32.totalorder %s937_s8, %s933_s30  ;;  %p941_p8 = scmp.lt.u32.totalorder %s933_s30, %s1336_s26 }
 0x1ca   : > { %p935_p10 = pnand %p934_p6, %p1498_p2 }
 0x1cb   : > { %p940_p11 = por %p939_p9, %p938_p4 }
 0x1cc   : > { %p936_p3 = pneg %p935_p10 }
 0x1cd   : > { %p942_p13 = por %p941_p8, %p940_p11 }
 0x1cf   : > { %p943_p5 = pnand %p942_p13, %p936_p3 }
 0x1d1   : > { %946 = shalt.err (!%p943_p5)
}
 0x1d2   : > { %s1486_s24 = smov 4   ;;  %v415_v25 = vpop.permute.xlu1 %414  ;;  %v402_v26 = vpop.permute.xlu0 %401  ;;  %s474_s14 = sshll.u32 %s1314_s17, 4  ;;  %s1377_s14 = int_to_ptr.vmem [resolvable:$true] %s474_s14 }
 0x1d3   : > { %734 = dma.vmem_to_hbm [thread:$0]  (%p1498_p2), %s1330_s11, 256, %s1336_s26, %s1340_s21, %s1484_s16, %s1484_s16, %s1486_s24  }
 0x1d4   : > { %700 = vst.msk [vmem:[%s1319_s29 + $0x4] sm:$0xf] %vm391_vm1, %v415_v25  ;;  %697 = vst.msk [vmem:[%s1314_s17 + $0x4] sm:$0xf] %vm391_vm1, %v402_v26  ;;  %s508_s30 = sshll.u32 %s1319_s29, 4  ;;  %s1383_s28 = scalar_lea.hbm %s1477_s3, %s1326_s25  ;;  %s1385_s30 = int_to_ptr.vmem [resolvable:$true] %s508_s30 }
 0x1d5   : > { %s1391_s12 = scalar_lea.hbm %s1479_s5, %s1326_s25  ;;  %s450_s15 = scalar_lea.sflag [#allocation4], %s1297_s10 }
 0x1d6   : > { %v430_v27 = vpop.permute.xlu1 %429  ;;  %v420_v28 = vpop.permute.xlu0 %419  ;;  %s947_s11 = scalar_lea.vmem %s1377_s14, 256  ;;  %s1082_s26 = smov [#allocation8]  }
 0x1d7   : > { %703 = vst.msk [vmem:[%s1319_s29 + $0x8] sm:$0xf] %vm391_vm1, %v430_v27  ;;  %701 = vst.msk [vmem:[%s1314_s17 + $0x8] sm:$0xf] %vm391_vm1, %v420_v28  ;;  %p948_p7 = scmp.ne.s32.totalorder %s1377_s14, %s947_s11  ;;  %s951_s16 = sshll.u32 %s1082_s26, 4  ;;  %s952_s16 = int_to_ptr.vmem [resolvable:$false] %s951_s16 }
 0x1d8   : > { %s953_s24 = scalar_lea.vmem %s952_s16, 512  ;;  %p954_p1 = scmp.lt.s32.totalorder %s1377_s14, %s952_s16 }
 0x1d9   : > { %p949_p12 = pnand %p948_p7, %p1498_p2  ;;  %p955_p6 = scmp.lt.s32.totalorder %s953_s24, %s947_s11 }
 0x1da   : > { %v445_v29 = vpop.permute.xlu1 %444  ;;  %v435_v30 = vpop.permute.xlu0 %434 }
 0x1db   : > { %706 = vst.msk [vmem:[%s1319_s29 + $0xc] sm:$0xf] %vm391_vm1, %v445_v29  ;;  %704 = vst.msk [vmem:[%s1314_s17 + $0xc] sm:$0xf] %vm391_vm1, %v435_v30  ;;  %p950_p0 = pneg %p949_p12  ;;  %p956_p10 = por %p955_p6, %p954_p1 }
 0x1dd   : > { %p957_p3 = pnand %p956_p10, %p950_p0 }
 0x1df   : > { %960 = shalt.err (!%p957_p3)
}
 0x1e0   : > { %s961_s25 = scalar_lea.hbm %s1383_s28, 256  ;;  %s965_s9 = scalar_lea.hbm %s1477_s3, 512 }
 0x1e1   : > { %p962_p4 = scmp.ne.s32.totalorder %s1383_s28, %s961_s25  ;;  %p966_p8 = scmp.lt.u32.totalorder %s1383_s28, %s1477_s3 }
 0x1e2   : > { %p967_p13 = scmp.lt.u32.totalorder %s965_s9, %s961_s25  ;;  %p969_p7 = scmp.lt.u32.totalorder %s961_s25, %s1383_s28 }
 0x1e3   : > { %p963_p9 = pnand %p962_p4, %p1498_p2 }
 0x1e4   : > { %p968_p5 = por %p967_p13, %p966_p8 }
 0x1e5   : > { %p964_p11 = pneg %p963_p9 }
 0x1e6   : > { %p970_p12 = por %p969_p7, %p968_p5 }
 0x1e8   : > { %p971_p0 = pnand %p970_p12, %p964_p11 }
 0x1ea   : > { %974 = shalt.err (!%p971_p0)
}
 0x1eb   : > { %s1499_s24 = smov 4   ;;  %s1500_s11 = smov 64  }
 0x1ec   : > { %733 = dma.vmem_to_hbm [thread:$0]  (%p1498_p2), %s1377_s14, 256, %s1383_s28, %s450_s15, %s1500_s11, %s1500_s11, %s1499_s24  }
 0x1ed   : > { %s975_s26 = scalar_lea.vmem %s1385_s30, 256  ;;  %s1083_s25 = smov [#allocation11]  }
 0x1ee   : > { %p976_p1 = scmp.ne.s32.totalorder %s1385_s30, %s975_s26  ;;  %s979_s17 = sshll.u32 %s1083_s25, 4  ;;  %s980_s17 = int_to_ptr.vmem [resolvable:$false] %s979_s17 }
 0x1ef   : > { %s981_s29 = scalar_lea.vmem %s980_s17, 512  ;;  %p982_p3 = scmp.lt.s32.totalorder %s1385_s30, %s980_s17 }
 0x1f0   : > { %p977_p6 = pnand %p976_p1, %p1498_p2  ;;  %p983_p4 = scmp.lt.s32.totalorder %s981_s29, %s975_s26 }
 0x1f2   : > { %p978_p10 = pneg %p977_p6  ;;  %p984_p9 = por %p983_p4, %p982_p3 }
 0x1f4   : > { %p985_p11 = pnand %p984_p9, %p978_p10 }
 0x1f6   : > { %988 = shalt.err (!%p985_p11)
}
 0x1f7   : > { %s989_s10 = scalar_lea.hbm %s1391_s12, 256  ;;  %s993_s15 = scalar_lea.hbm %s1479_s5, 512 }
 0x1f8   : > { %p990_p8 = scmp.ne.s32.totalorder %s1391_s12, %s989_s10  ;;  %p994_p7 = scmp.lt.u32.totalorder %s1391_s12, %s1479_s5 }
 0x1f9   : > { %p995_p12 = scmp.lt.u32.totalorder %s993_s15, %s989_s10  ;;  %p997_p1 = scmp.lt.u32.totalorder %s989_s10, %s1391_s12 }
 0x1fa   : > { %p991_p13 = pnand %p990_p8, %p1498_p2 }
 0x1fb   : > { %p996_p0 = por %p995_p12, %p994_p7 }
 0x1fc   : > { %p992_p5 = pneg %p991_p13 }
 0x1fd   : > { %p998_p6 = por %p997_p1, %p996_p0 }
 0x1ff   : > { %p999_p10 = pnand %p998_p6, %p992_p5 }
 0x201   : > { %1002 = shalt.err (!%p999_p10)
}
 0x202   : > { %735 = dma.vmem_to_hbm [thread:$0]  (%p1498_p2), %s1385_s30, 256, %s1391_s12, %s1340_s21, %s1500_s11, %s1500_s11, %s1499_s24  }
 0x203 PF: > { %s523_s16 = sand.u32 1, %s1045_s18   ;;  %p1501_p3 = scmp.ne.s32.totalorder %s1489_s27, 0 }
 0x204   : > { %p1502_p4 = scmp.ge.s32.totalorder %s1065_s23, 2  ;;  %s524_s26 = scalar_lea.sflag [#allocation4], %s523_s16 }
 0x206   : > { %p751_p9 = pnand %p1502_p4, %p1501_p3 }
 0x208   : > { %1036 = dma.done.wait (!%p751_p9), %s524_s26, 256  }
 0x209   : > { %1038 = vsyncadd (!%p751_p9), %s524_s26, 4294967040  ;;  %s1503_s6 = sadd.s32 4294967294, %s1065_s23  }
 0x20a   : > { %s532_s25 = sand.u32 1, %s1503_s6  }
 0x20b   : > { %s533_s17 = scalar_lea.sflag [#allocation10], %s532_s25 }
 0x20c   : > { %1040 = dma.done.wait (!%p751_p9), %s533_s17, 512  }
 0x20d   : > { %1042 = vsyncadd (!%p751_p9), %s533_s17, 4294966784  ;;  %s26_s23 = sadd.s32 1, %s1065_s23   ;;  %s1504_s18 = smov %s1049_s19 }
 0x20e   : > { %p23_p2 = scmp.ge.s32.totalorder %s26_s23, 4   ;;  %s1505_s19 = smov %s1053_s20 }
 0x20f   : > { %s1506_s20 = smov %s1254_s13  ;;  %s1507_s21 = smov %s1061_s22 }
 0x210   : > { %s1508_s22 = smov %s1510_s7  ;;  %25 = sbr.rel (!%p23_p2) target bundleno = 9 (0x9), region = 126 }
 0x217   :  { %547 = vsyncpa [#allocation3], 1 }
 0x218   :  { %549 = vsyncpa [#allocation3 + $0x1], 1 }
 0x219   :  { %550 = vsyncpa [#allocation6], 1 }
 0x21a   :  { %551 = vsyncpa [#allocation4], 1 }
 0x21b   :  { %553 = vsyncpa [#allocation4 + $0x1], 1 }
 0x21c   :  { %554 = vsyncpa [#allocation10], 1 }
 0x21d   :  { %556 = vsyncpa [#allocation10 + $0x1], 1 }

</bundles_post_ra>
